<compile_context>
chip_gen: v7x
topology: tpu7x:2x2x1
jax: 0.10.0
libtpu: 0.0.40
codegen_flags: <defaults>
</compile_context>

<pallas_src>
import functools

import jax
import jax.numpy as jnp
from jax.experimental import pallas as pl
from jax.experimental.pallas import tpu as pltpu


def _round_up(x, m):
    return (x + m - 1) // m * m


# ----------------------------- Pallas kernel --------------------------------
def _embed_kernel(rows_ref, table_ref, out_ref, *, block_rows):
    # rows_ref:  SMEM scalar-prefetch ref, shape (B_pad,) int32 -> final row ids.
    # table_ref: full embedding table resident in VMEM, (num_rows, hidden).
    # out_ref:   (block_rows, hidden) VMEM output tile for this grid step.
    base = pl.program_id(0) * block_rows

    def body(j, carry):
        row = rows_ref[base + j]
        out_ref[pl.ds(j, 1), :] = table_ref[pl.ds(row, 1), :]
        return carry

    jax.lax.fori_loop(0, block_rows, body, 0, unroll=(block_rows <= 32))


def label_embed_pallas(table, rows):
    """Gather rows of `table` (VMEM-resident) according to int32 `rows` indices."""
    b = rows.shape[0]
    num_rows, hidden = table.shape

    # Sublane-dense output tile: multiple of 8 rows per grid step.
    tb = 128 if b >= 128 else _round_up(max(b, 1), 8)
    b_pad = _round_up(b, tb)

    rows_padded = jnp.zeros((b_pad,), jnp.int32).at[:b].set(rows.astype(jnp.int32))

    # VMEM budget: resident table + double-buffered output tiles (+ headroom).
    # Sized explicitly so the resident-table fast path also fits v7x's 64 MiB/TC.
    itemsize = jnp.dtype(table.dtype).itemsize
    table_bytes = num_rows * hidden * itemsize
    out_block_bytes = tb * hidden * itemsize
    vmem_limit = int(min(
        max(32 * 1024 * 1024, 2 * (table_bytes + 2 * out_block_bytes)),
        100 * 1024 * 1024,
    ))

    kernel = functools.partial(_embed_kernel, block_rows=tb)

    out_padded = pl.pallas_call(
        kernel,
        grid_spec=pltpu.PrefetchScalarGridSpec(
            num_scalar_prefetch=1,           # rows -> SMEM
            grid=(b_pad // tb,),
            in_specs=[
                # Whole table, constant block index -> fetched to VMEM once.
                pl.BlockSpec((num_rows, hidden), lambda i, rows_ref: (0, 0)),
            ],
            out_specs=pl.BlockSpec((tb, hidden), lambda i, rows_ref: (i, 0)),
        ),
        out_shape=jax.ShapeDtypeStruct((b_pad, hidden), table.dtype),
        compiler_params=pltpu.CompilerParams(
            dimension_semantics=("parallel",),   # independent rows -> megacore on v7x
            vmem_limit_bytes=vmem_limit,
        ),
    )(rows_padded, table)

    return out_padded[:b]


# --------------------------- Module-level wrapper ----------------------------
class LabelEmbedder:
    """JAX/Pallas port of the PyTorch LabelEmbedder."""

    def __init__(self, num_classes, hidden_size, dropout_prob, *, param_key):
        use_cfg_embedding = int(dropout_prob > 0)
        # Deterministic synthetic init (nn.Embedding default ~ N(0, 1)).
        self.embedding_table = jax.random.normal(
            param_key, (num_classes + use_cfg_embedding, hidden_size), jnp.float32
        )
        self.num_classes = num_classes
        self.hidden_size = hidden_size
        self.dropout_prob = dropout_prob

    def _token_drop_rows(self, labels, rng, force_drop_ids):
        if force_drop_ids is None:
            assert rng is not None, "rng is required for train-mode label dropout"
            drop = jax.random.uniform(rng, (labels.shape[0],)) < self.dropout_prob
        else:
            drop = force_drop_ids == 1
        return jnp.where(drop, jnp.int32(self.num_classes), labels.astype(jnp.int32))

    def __call__(self, labels, train, rng=None, force_drop_ids=None):
        use_dropout = self.dropout_prob > 0
        rows = labels.astype(jnp.int32)
        if (train and use_dropout) or (force_drop_ids is not None):
            rows = self._token_drop_rows(rows, rng, force_drop_ids)
        # Guard: if dropout_prob == 0 there is no CFG row; clamp so a forced
        # drop can never index out of bounds inside the kernel.
        rows = jnp.clip(rows, 0, self.embedding_table.shape[0] - 1)
        return label_embed_pallas(self.embedding_table, rows)


# ---------------------------------- main -------------------------------------
if __name__ == "__main__":
    key = jax.random.PRNGKey(0)
    k_param, k_labels, k_drop = jax.random.split(key, 3)

    num_classes = 10
    hidden_size = 128
    dropout_prob = 0.1
    batch = 16

    embedder = LabelEmbedder(
        num_classes, hidden_size, dropout_prob, param_key=k_param
    )

    labels = jax.random.randint(k_labels, (batch,), 0, num_classes, jnp.int32)

    # Case 1: eval mode (no dropout).
    out_eval = embedder(labels, train=False)
    out_eval = jax.block_until_ready(out_eval)
    ref_eval = jnp.take(embedder.embedding_table, labels, axis=0)
    assert out_eval.shape == (batch, hidden_size)
    assert jnp.allclose(out_eval, ref_eval), "eval-mode embedding mismatch"

    # Case 2: forced drop ids (deterministic CFG drop path).
    force_drop = jnp.array(
        [1, 0, 1, 0, 0, 1, 0, 0, 0, 1, 0, 0, 1, 0, 0, 1], jnp.int32
    )
    out_drop = embedder(labels, train=True, force_drop_ids=force_drop)
    out_drop = jax.block_until_ready(out_drop)
    dropped_labels = jnp.where(force_drop == 1, num_classes, labels)
    ref_drop = jnp.take(embedder.embedding_table, dropped_labels, axis=0)
    assert jnp.allclose(out_drop, ref_drop), "forced-drop embedding mismatch"

    # Case 3: train-mode random dropout (RNG-driven; shape/run check only).
    out_train = embedder(labels, train=True, rng=k_drop)
    jax.block_until_ready(out_train)
    assert out_train.shape == (batch, hidden_size)

    print("KERNEL_OK")
</pallas_src>

<mosaic_0001>
module attributes {stable_mosaic.version = 11 : i64} {
  func.func @_embed_kernel(%arg0: i32, %arg1: memref<16xi32, #tpu.memory_space<smem>>, %arg2: memref<11x128xf32, #tpu.memory_space<vmem>>, %arg3: memref<16x128xf32, #tpu.memory_space<vmem>>) attributes {dimension_semantics = [#tpu.dimension_semantics<parallel>], iteration_bounds = array<i64: 1>, scalar_prefetch = 1 : i64, scratch_operands = 0 : i64, tpu.core_type = #tpu.core_type<tc>, window_params = [{pipeline_mode = #tpu.pipeline_mode<synchronous>, transform_indices = @transform_0, window_bounds = array<i64: 11, 128>}, {transform_indices = @transform_1, window_bounds = array<i64: 16, 128>}]} {
    %c16_i32 = arith.constant 16 : i32
    %0 = arith.muli %arg0, %c16_i32 : i32
    %c0_i32 = arith.constant 0 : i32
    %1 = arith.addi %0, %c0_i32 : i32
    %2 = arith.index_cast %1 : i32 to index
    %3 = memref.load %arg1[%2] : memref<16xi32, #tpu.memory_space<smem>>
    %4 = arith.index_cast %3 : i32 to index
    %c0 = arith.constant 0 : index
    %5 = vector.load %arg2[%4, %c0] : memref<11x128xf32, #tpu.memory_space<vmem>>, vector<1x128xf32>
    %6 = arith.index_cast %c0_i32 : i32 to index
    %c0_0 = arith.constant 0 : index
    %7 = vector.load %arg3[%6, %c0_0] : memref<16x128xf32, #tpu.memory_space<vmem>>, vector<1x128xf32>
    tpu.vector_store %arg3[%6, %c0_0], %5 {strides = array<i32>} : memref<16x128xf32, #tpu.memory_space<vmem>>, vector<1x128xf32>,
    %c1_i32 = arith.constant 1 : i32
    %8 = arith.addi %0, %c1_i32 : i32
    %9 = arith.index_cast %8 : i32 to index
    %10 = memref.load %arg1[%9] : memref<16xi32, #tpu.memory_space<smem>>
    %11 = arith.index_cast %10 : i32 to index
    %c0_1 = arith.constant 0 : index
    %12 = vector.load %arg2[%11, %c0_1] : memref<11x128xf32, #tpu.memory_space<vmem>>, vector<1x128xf32>
    %13 = arith.index_cast %c1_i32 : i32 to index
    %c0_2 = arith.constant 0 : index
    %14 = vector.load %arg3[%13, %c0_2] : memref<16x128xf32, #tpu.memory_space<vmem>>, vector<1x128xf32>
    tpu.vector_store %arg3[%13, %c0_2], %12 {strides = array<i32>} : memref<16x128xf32, #tpu.memory_space<vmem>>, vector<1x128xf32>,
    %c2_i32 = arith.constant 2 : i32
    %15 = arith.addi %0, %c2_i32 : i32
    %16 = arith.index_cast %15 : i32 to index
    %17 = memref.load %arg1[%16] : memref<16xi32, #tpu.memory_space<smem>>
    %18 = arith.index_cast %17 : i32 to index
    %c0_3 = arith.constant 0 : index
    %19 = vector.load %arg2[%18, %c0_3] : memref<11x128xf32, #tpu.memory_space<vmem>>, vector<1x128xf32>
    %20 = arith.index_cast %c2_i32 : i32 to index
    %c0_4 = arith.constant 0 : index
    %21 = vector.load %arg3[%20, %c0_4] : memref<16x128xf32, #tpu.memory_space<vmem>>, vector<1x128xf32>
    tpu.vector_store %arg3[%20, %c0_4], %19 {strides = array<i32>} : memref<16x128xf32, #tpu.memory_space<vmem>>, vector<1x128xf32>,
    %c3_i32 = arith.constant 3 : i32
    %22 = arith.addi %0, %c3_i32 : i32
    %23 = arith.index_cast %22 : i32 to index
    %24 = memref.load %arg1[%23] : memref<16xi32, #tpu.memory_space<smem>>
    %25 = arith.index_cast %24 : i32 to index
    %c0_5 = arith.constant 0 : index
    %26 = vector.load %arg2[%25, %c0_5] : memref<11x128xf32, #tpu.memory_space<vmem>>, vector<1x128xf32>
    %27 = arith.index_cast %c3_i32 : i32 to index
    %c0_6 = arith.constant 0 : index
    %28 = vector.load %arg3[%27, %c0_6] : memref<16x128xf32, #tpu.memory_space<vmem>>, vector<1x128xf32>
    tpu.vector_store %arg3[%27, %c0_6], %26 {strides = array<i32>} : memref<16x128xf32, #tpu.memory_space<vmem>>, vector<1x128xf32>,
    %c4_i32 = arith.constant 4 : i32
    %29 = arith.addi %0, %c4_i32 : i32
    %30 = arith.index_cast %29 : i32 to index
    %31 = memref.load %arg1[%30] : memref<16xi32, #tpu.memory_space<smem>>
    %32 = arith.index_cast %31 : i32 to index
    %c0_7 = arith.constant 0 : index
    %33 = vector.load %arg2[%32, %c0_7] : memref<11x128xf32, #tpu.memory_space<vmem>>, vector<1x128xf32>
    %34 = arith.index_cast %c4_i32 : i32 to index
    %c0_8 = arith.constant 0 : index
    %35 = vector.load %arg3[%34, %c0_8] : memref<16x128xf32, #tpu.memory_space<vmem>>, vector<1x128xf32>
    tpu.vector_store %arg3[%34, %c0_8], %33 {strides = array<i32>} : memref<16x128xf32, #tpu.memory_space<vmem>>, vector<1x128xf32>,
    %c5_i32 = arith.constant 5 : i32
    %36 = arith.addi %0, %c5_i32 : i32
    %37 = arith.index_cast %36 : i32 to index
    %38 = memref.load %arg1[%37] : memref<16xi32, #tpu.memory_space<smem>>
    %39 = arith.index_cast %38 : i32 to index
    %c0_9 = arith.constant 0 : index
    %40 = vector.load %arg2[%39, %c0_9] : memref<11x128xf32, #tpu.memory_space<vmem>>, vector<1x128xf32>
    %41 = arith.index_cast %c5_i32 : i32 to index
    %c0_10 = arith.constant 0 : index
    %42 = vector.load %arg3[%41, %c0_10] : memref<16x128xf32, #tpu.memory_space<vmem>>, vector<1x128xf32>
    tpu.vector_store %arg3[%41, %c0_10], %40 {strides = array<i32>} : memref<16x128xf32, #tpu.memory_space<vmem>>, vector<1x128xf32>,
    %c6_i32 = arith.constant 6 : i32
    %43 = arith.addi %0, %c6_i32 : i32
    %44 = arith.index_cast %43 : i32 to index
    %45 = memref.load %arg1[%44] : memref<16xi32, #tpu.memory_space<smem>>
    %46 = arith.index_cast %45 : i32 to index
    %c0_11 = arith.constant 0 : index
    %47 = vector.load %arg2[%46, %c0_11] : memref<11x128xf32, #tpu.memory_space<vmem>>, vector<1x128xf32>
    %48 = arith.index_cast %c6_i32 : i32 to index
    %c0_12 = arith.constant 0 : index
    %49 = vector.load %arg3[%48, %c0_12] : memref<16x128xf32, #tpu.memory_space<vmem>>, vector<1x128xf32>
    tpu.vector_store %arg3[%48, %c0_12], %47 {strides = array<i32>} : memref<16x128xf32, #tpu.memory_space<vmem>>, vector<1x128xf32>,
    %c7_i32 = arith.constant 7 : i32
    %50 = arith.addi %0, %c7_i32 : i32
    %51 = arith.index_cast %50 : i32 to index
    %52 = memref.load %arg1[%51] : memref<16xi32, #tpu.memory_space<smem>>
    %53 = arith.index_cast %52 : i32 to index
    %c0_13 = arith.constant 0 : index
    %54 = vector.load %arg2[%53, %c0_13] : memref<11x128xf32, #tpu.memory_space<vmem>>, vector<1x128xf32>
    %55 = arith.index_cast %c7_i32 : i32 to index
    %c0_14 = arith.constant 0 : index
    %56 = vector.load %arg3[%55, %c0_14] : memref<16x128xf32, #tpu.memory_space<vmem>>, vector<1x128xf32>
    tpu.vector_store %arg3[%55, %c0_14], %54 {strides = array<i32>} : memref<16x128xf32, #tpu.memory_space<vmem>>, vector<1x128xf32>,
    %c8_i32 = arith.constant 8 : i32
    %57 = arith.addi %0, %c8_i32 : i32
    %58 = arith.index_cast %57 : i32 to index
    %59 = memref.load %arg1[%58] : memref<16xi32, #tpu.memory_space<smem>>
    %60 = arith.index_cast %59 : i32 to index
    %c0_15 = arith.constant 0 : index
    %61 = vector.load %arg2[%60, %c0_15] : memref<11x128xf32, #tpu.memory_space<vmem>>, vector<1x128xf32>
    %62 = arith.index_cast %c8_i32 : i32 to index
    %c0_16 = arith.constant 0 : index
    %63 = vector.load %arg3[%62, %c0_16] : memref<16x128xf32, #tpu.memory_space<vmem>>, vector<1x128xf32>
    tpu.vector_store %arg3[%62, %c0_16], %61 {strides = array<i32>} : memref<16x128xf32, #tpu.memory_space<vmem>>, vector<1x128xf32>,
    %c9_i32 = arith.constant 9 : i32
    %64 = arith.addi %0, %c9_i32 : i32
    %65 = arith.index_cast %64 : i32 to index
    %66 = memref.load %arg1[%65] : memref<16xi32, #tpu.memory_space<smem>>
    %67 = arith.index_cast %66 : i32 to index
    %c0_17 = arith.constant 0 : index
    %68 = vector.load %arg2[%67, %c0_17] : memref<11x128xf32, #tpu.memory_space<vmem>>, vector<1x128xf32>
    %69 = arith.index_cast %c9_i32 : i32 to index
    %c0_18 = arith.constant 0 : index
    %70 = vector.load %arg3[%69, %c0_18] : memref<16x128xf32, #tpu.memory_space<vmem>>, vector<1x128xf32>
    tpu.vector_store %arg3[%69, %c0_18], %68 {strides = array<i32>} : memref<16x128xf32, #tpu.memory_space<vmem>>, vector<1x128xf32>,
    %c10_i32 = arith.constant 10 : i32
    %71 = arith.addi %0, %c10_i32 : i32
    %72 = arith.index_cast %71 : i32 to index
    %73 = memref.load %arg1[%72] : memref<16xi32, #tpu.memory_space<smem>>
    %74 = arith.index_cast %73 : i32 to index
    %c0_19 = arith.constant 0 : index
    %75 = vector.load %arg2[%74, %c0_19] : memref<11x128xf32, #tpu.memory_space<vmem>>, vector<1x128xf32>
    %76 = arith.index_cast %c10_i32 : i32 to index
    %c0_20 = arith.constant 0 : index
    %77 = vector.load %arg3[%76, %c0_20] : memref<16x128xf32, #tpu.memory_space<vmem>>, vector<1x128xf32>
    tpu.vector_store %arg3[%76, %c0_20], %75 {strides = array<i32>} : memref<16x128xf32, #tpu.memory_space<vmem>>, vector<1x128xf32>,
    %c11_i32 = arith.constant 11 : i32
    %78 = arith.addi %0, %c11_i32 : i32
    %79 = arith.index_cast %78 : i32 to index
    %80 = memref.load %arg1[%79] : memref<16xi32, #tpu.memory_space<smem>>
    %81 = arith.index_cast %80 : i32 to index
    %c0_21 = arith.constant 0 : index
    %82 = vector.load %arg2[%81, %c0_21] : memref<11x128xf32, #tpu.memory_space<vmem>>, vector<1x128xf32>
    %83 = arith.index_cast %c11_i32 : i32 to index
    %c0_22 = arith.constant 0 : index
    %84 = vector.load %arg3[%83, %c0_22] : memref<16x128xf32, #tpu.memory_space<vmem>>, vector<1x128xf32>
    tpu.vector_store %arg3[%83, %c0_22], %82 {strides = array<i32>} : memref<16x128xf32, #tpu.memory_space<vmem>>, vector<1x128xf32>,
    %c12_i32 = arith.constant 12 : i32
    %85 = arith.addi %0, %c12_i32 : i32
    %86 = arith.index_cast %85 : i32 to index
    %87 = memref.load %arg1[%86] : memref<16xi32, #tpu.memory_space<smem>>
    %88 = arith.index_cast %87 : i32 to index
    %c0_23 = arith.constant 0 : index
    %89 = vector.load %arg2[%88, %c0_23] : memref<11x128xf32, #tpu.memory_space<vmem>>, vector<1x128xf32>
    %90 = arith.index_cast %c12_i32 : i32 to index
    %c0_24 = arith.constant 0 : index
    %91 = vector.load %arg3[%90, %c0_24] : memref<16x128xf32, #tpu.memory_space<vmem>>, vector<1x128xf32>
    tpu.vector_store %arg3[%90, %c0_24], %89 {strides = array<i32>} : memref<16x128xf32, #tpu.memory_space<vmem>>, vector<1x128xf32>,
    %c13_i32 = arith.constant 13 : i32
    %92 = arith.addi %0, %c13_i32 : i32
    %93 = arith.index_cast %92 : i32 to index
    %94 = memref.load %arg1[%93] : memref<16xi32, #tpu.memory_space<smem>>
    %95 = arith.index_cast %94 : i32 to index
    %c0_25 = arith.constant 0 : index
    %96 = vector.load %arg2[%95, %c0_25] : memref<11x128xf32, #tpu.memory_space<vmem>>, vector<1x128xf32>
    %97 = arith.index_cast %c13_i32 : i32 to index
    %c0_26 = arith.constant 0 : index
    %98 = vector.load %arg3[%97, %c0_26] : memref<16x128xf32, #tpu.memory_space<vmem>>, vector<1x128xf32>
    tpu.vector_store %arg3[%97, %c0_26], %96 {strides = array<i32>} : memref<16x128xf32, #tpu.memory_space<vmem>>, vector<1x128xf32>,
    %c14_i32 = arith.constant 14 : i32
    %99 = arith.addi %0, %c14_i32 : i32
    %100 = arith.index_cast %99 : i32 to index
    %101 = memref.load %arg1[%100] : memref<16xi32, #tpu.memory_space<smem>>
    %102 = arith.index_cast %101 : i32 to index
    %c0_27 = arith.constant 0 : index
    %103 = vector.load %arg2[%102, %c0_27] : memref<11x128xf32, #tpu.memory_space<vmem>>, vector<1x128xf32>
    %104 = arith.index_cast %c14_i32 : i32 to index
    %c0_28 = arith.constant 0 : index
    %105 = vector.load %arg3[%104, %c0_28] : memref<16x128xf32, #tpu.memory_space<vmem>>, vector<1x128xf32>
    tpu.vector_store %arg3[%104, %c0_28], %103 {strides = array<i32>} : memref<16x128xf32, #tpu.memory_space<vmem>>, vector<1x128xf32>,
    %c15_i32 = arith.constant 15 : i32
    %106 = arith.addi %0, %c15_i32 : i32
    %107 = arith.index_cast %106 : i32 to index
    %108 = memref.load %arg1[%107] : memref<16xi32, #tpu.memory_space<smem>>
    %109 = arith.index_cast %108 : i32 to index
    %c0_29 = arith.constant 0 : index
    %110 = vector.load %arg2[%109, %c0_29] : memref<11x128xf32, #tpu.memory_space<vmem>>, vector<1x128xf32>
    %111 = arith.index_cast %c15_i32 : i32 to index
    %c0_30 = arith.constant 0 : index
    %112 = vector.load %arg3[%111, %c0_30] : memref<16x128xf32, #tpu.memory_space<vmem>>, vector<1x128xf32>
    tpu.vector_store %arg3[%111, %c0_30], %110 {strides = array<i32>} : memref<16x128xf32, #tpu.memory_space<vmem>>, vector<1x128xf32>,
    %c16_i32_31 = arith.constant 16 : i32
    return
  }
  func.func @transform_0(%arg0: i32, %arg1: memref<16xi32, #tpu.memory_space<smem>>) -> (i32, i32) {
    %c0_i32 = arith.constant 0 : i32
    %c0_i32_0 = arith.constant 0 : i32
    %c0_i32_1 = arith.constant 0 : i32
    return %c0_i32, %c0_i32_0 : i32, i32
  }
  func.func @transform_1(%arg0: i32, %arg1: memref<16xi32, #tpu.memory_space<smem>>) -> (i32, i32) {
    %c0_i32 = arith.constant 0 : i32
    %c0_i32_0 = arith.constant 0 : i32
    return %arg0, %c0_i32 : i32, i32
  }
}

</mosaic_0001>

<bundles_post_ra>
// kernel: tpu_custom_call.1
= control target key start
LH: loop header
LB: loop body
LE: loop exit
PB: predicated region body
PF: predicated region fallthrough
CT: control target
= control target key end

     0   :  { %s295_s0 = inlined_call_operand.hbm [shape: s32[16], index: 0, kind: input, shape index: {}]   ;;  %s296_s1 = inlined_call_operand.hbm [shape: f32[11,128], index: 1, kind: input, shape index: {}]   ;;  %s297_s2 = inlined_call_operand.hbm [shape: f32[16,128], index: 2, kind: output, shape index: {}]  }
   0x1   :  { %s161_s11 = scalar_lea.hbm %s295_s0, 16 }
   0x2   :  { %p162_p0 = scmp.ne.s32.totalorder %s295_s0, %s161_s11  ;;  %p165_p1 = scmp.lt.u32.totalorder %s161_s11, %s295_s0 }
   0x4   :  { %p167_p2 = pnand %p165_p1, %p162_p0 }
   0x6   :  { %170 = shalt.err (!%p167_p2)  }
   0x7   :  { %s221_s16 = smov [#allocation3]  }
   0x8   :  { %8 = dma.hbm_to_smem %s295_s0, 16, %s221_s16, [#allocation2] }
   0x9   :  { %215 = dma.done.wait [#allocation2], 16 }
   0xa   :  { %216 = vsyncadd [#allocation2], 4294967280 }
   0xb   :  { %10 = sfence }
   0xc   :  { %11 = vsyncpa [#allocation5], 0 }
   0xd   :  { %12 = vsyncpa [#allocation6], 0  ;;  %s222_s19 = smov [#allocation4]   ;;  %s171_s23 = scalar_lea.hbm %s296_s1, 256 }
   0xe   :  { %s18_s20 = sshll.u32 %s222_s19, 4  ;;  %p172_p3 = scmp.ne.s32.totalorder %s296_s1, %s171_s23  ;;  %s19_s20 = int_to_ptr.vmem [resolvable:$true] %s18_s20 }
   0xf   :  { %p175_p4 = scmp.lt.u32.totalorder %s171_s23, %s296_s1 }
  0x11   :  { %p177_p5 = pnand %p175_p4, %p172_p3 }
  0x13   :  { %180 = shalt.err (!%p177_p5)
}
  0x14   :  { %s181_s0 = scalar_lea.vmem %s19_s20, 256  ;;  %p186_p7 = scmp.lt.s32.totalorder %s19_s20, %s19_s20 }
  0x15   :  { %p182_p6 = scmp.ne.s32.totalorder %s19_s20, %s181_s0  ;;  %p187_p8 = scmp.lt.s32.totalorder %s181_s0, %s181_s0 }
  0x17   :  { %p188_p9 = por %p187_p8, %p186_p7 }
  0x19   :  { %p189_p10 = pnand %p188_p9, %p182_p6 }
  0x1b   :  { %192 = shalt.err (!%p189_p10)
}
  0x1c   :  { %s223_s28 = smov 128   ;;  %s224_s29 = smov 8  }
  0x1d   :  { %24 = dma.hbm_to_vmem [thread:$0]  %s296_s1, 256, %s19_s20, [#allocation5], %s223_s28, %s223_s28, %s224_s29  }
  0x1e   :  { %217 = dma.done.wait [#allocation5], 256  }
  0x1f   :  { %218 = vsyncadd [#allocation5], 4294967040  ;;  %s29_s4 = sld [smem:[#allocation3]]  ;;  %s141_s5 = sld [smem:[#allocation3 + $0x1]] }
  0x20   :  { %s142_s6 = sld [smem:[#allocation3 + $0x2]]  ;;  %s143_s7 = sld [smem:[#allocation3 + $0x3]] }
  0x21   :  { %s144_s8 = sld [smem:[#allocation3 + $0x4]]  ;;  %s145_s9 = sld [smem:[#allocation3 + $0x5]] }
  0x22   :  { %s146_s10 = sld [smem:[#allocation3 + $0x6]]  ;;  %s147_s11 = sld [smem:[#allocation3 + $0x7]] }
  0x23   :  { %s268_s12 = sld [smem:[#allocation3 + $0x8]]  ;;  %s270_s13 = sld [smem:[#allocation3 + $0x9]] }
  0x24   :  { %s272_s14 = sld [smem:[#allocation3 + $0xa]]  ;;  %s274_s15 = sld [smem:[#allocation3 + $0xb]] }
  0x25   :  { %s30_s16 = scalar_lea.vmem [#allocation4], %s29_s4  ;;  %s35_s1 = scalar_lea.vmem [#allocation4], %s141_s5 }
  0x26   :  { %v31_v0 = vld [vmem:[%s30_s16] sm:$0x1]  ;;  %s40_s17 = scalar_lea.vmem [#allocation4], %s142_s6  ;;  %s45_s18 = scalar_lea.vmem [#allocation4], %s143_s7 }
  0x27   :  { %v36_v1 = vld [vmem:[%s35_s1] sm:$0x1]  ;;  %32 = vst [vmem:[#allocation7] sm:$0x1] %v31_v0  ;;  %s50_s19 = scalar_lea.vmem [#allocation4], %s144_s8  ;;  %s55_s20 = scalar_lea.vmem [#allocation4], %s145_s9 }
  0x28   :  { %37 = vst [vmem:[#allocation7 + $0x1] sm:$0x1] %v36_v1  ;;  %v41_v2 = vld [vmem:[%s40_s17] sm:$0x1]  ;;  %s60_s21 = scalar_lea.vmem [#allocation4], %s146_s10  ;;  %s65_s22 = scalar_lea.vmem [#allocation4], %s147_s11 }
  0x29   :  { %v46_v3 = vld [vmem:[%s45_s18] sm:$0x1]  ;;  %42 = vst [vmem:[#allocation7 + $0x2] sm:$0x1] %v41_v2  ;;  %s70_s23 = scalar_lea.vmem [#allocation4], %s268_s12  ;;  %s75_s24 = scalar_lea.vmem [#allocation4], %s270_s13 }
  0x2a   :  { %47 = vst [vmem:[#allocation7 + $0x3] sm:$0x1] %v46_v3  ;;  %v51_v4 = vld [vmem:[%s50_s19] sm:$0x1]  ;;  %s80_s25 = scalar_lea.vmem [#allocation4], %s272_s14  ;;  %s85_s26 = scalar_lea.vmem [#allocation4], %s274_s15 }
  0x2b   :  { %v56_v5 = vld [vmem:[%s55_s20] sm:$0x1]  ;;  %52 = vst [vmem:[#allocation7 + $0x4] sm:$0x1] %v51_v4  ;;  %s152_s27 = sld [smem:[#allocation3 + $0xc]]  ;;  %s153_s0 = sld [smem:[#allocation3 + $0xd]] }
  0x2c   :  { %57 = vst [vmem:[#allocation7 + $0x5] sm:$0x1] %v56_v5  ;;  %v61_v6 = vld [vmem:[%s60_s21] sm:$0x1]  ;;  %s154_s30 = sld [smem:[#allocation3 + $0xe]]  ;;  %s155_s3 = sld [smem:[#allocation3 + $0xf]] }
  0x2d   :  { %v66_v7 = vld [vmem:[%s65_s22] sm:$0x1]  ;;  %62 = vst [vmem:[#allocation7 + $0x6] sm:$0x1] %v61_v6  ;;  %s225_s4 = smov [#allocation7]  }
  0x2e   :  { %67 = vst [vmem:[#allocation7 + $0x7] sm:$0x1] %v66_v7  ;;  %v71_v8 = vld [vmem:[%s70_s23] sm:$0x1]  ;;  %s113_s5 = sshll.u32 %s225_s4, 4  ;;  %s114_s5 = int_to_ptr.vmem [resolvable:$true] %s113_s5 }
  0x2f   :  { %v76_v9 = vld [vmem:[%s75_s24] sm:$0x1]  ;;  %72 = vst [vmem:[#allocation7 + $0x8] sm:$0x1] %v71_v8  ;;  %s193_s10 = scalar_lea.vmem %s114_s5, 256  ;;  %p198_p12 = scmp.lt.s32.totalorder %s114_s5, %s114_s5 }
  0x30   :  { %77 = vst [vmem:[#allocation7 + $0x9] sm:$0x1] %v76_v9  ;;  %v81_v10 = vld [vmem:[%s80_s25] sm:$0x1]  ;;  %p194_p11 = scmp.ne.s32.totalorder %s114_s5, %s193_s10  ;;  %p199_p13 = scmp.lt.s32.totalorder %s193_s10, %s193_s10 }
  0x31   :  { %v86_v11 = vld [vmem:[%s85_s26] sm:$0x1]  ;;  %82 = vst [vmem:[#allocation7 + $0xa] sm:$0x1] %v81_v10  ;;  %s90_s6 = scalar_lea.vmem [#allocation4], %s152_s27  ;;  %s95_s7 = scalar_lea.vmem [#allocation4], %s153_s0 }
  0x32   :  { %87 = vst [vmem:[#allocation7 + $0xb] sm:$0x1] %v86_v11  ;;  %v91_v12 = vld [vmem:[%s90_s6] sm:$0x1]  ;;  %s100_s8 = scalar_lea.vmem [#allocation4], %s154_s30  ;;  %s105_s9 = scalar_lea.vmem [#allocation4], %s155_s3 }
  0x33   :  { %92 = vst [vmem:[#allocation7 + $0xc] sm:$0x1] %v91_v12  ;;  %v96_v13 = vld [vmem:[%s95_s7] sm:$0x1]  ;;  %p200_p0 = por %p199_p13, %p198_p12 }
  0x34   :  { %v101_v14 = vld [vmem:[%s100_s8] sm:$0x1]  ;;  %97 = vst [vmem:[#allocation7 + $0xd] sm:$0x1] %v96_v13 }
  0x35   :  { %102 = vst [vmem:[#allocation7 + $0xe] sm:$0x1] %v101_v14  ;;  %v106_v15 = vld [vmem:[%s105_s9] sm:$0x1]  ;;  %p201_p1 = pnand %p200_p0, %p194_p11 }
  0x36   :  { %107 = vst [vmem:[#allocation7 + $0xf] sm:$0x1] %v106_v15 }
  0x37   :  { %204 = shalt.err (!%p201_p1)
}
  0x38   :  { %s205_s13 = scalar_lea.hbm %s297_s2, 256 }
  0x39   :  { %p206_p2 = scmp.ne.s32.totalorder %s297_s2, %s205_s13  ;;  %p209_p3 = scmp.lt.u32.totalorder %s205_s13, %s297_s2 }
  0x3b   :  { %p211_p4 = pnand %p209_p3, %p206_p2 }
  0x3d   :  { %214 = shalt.err (!%p211_p4)
}
  0x3e   :  { %119 = dma.vmem_to_hbm [thread:$0]  %s114_s5, 256, %s297_s2, [#allocation6], %s223_s28, %s223_s28, %s224_s29  }
  0x3f   :  { %219 = dma.done.wait [#allocation6], 256  }
  0x40   :  { %220 = vsyncadd [#allocation6], 4294967040 }
  0x41   :  { %123 = vsyncpa [#allocation5], 1 }
  0x42   :  { %124 = vsyncpa [#allocation6], 1 }

</bundles_post_ra>
